<compile_context>
chip_gen: v7x
topology: tpu7x:2x2x1
jax: 0.10.0
libtpu: 0.0.40
codegen_flags: <defaults>
</compile_context>

<pallas_src>
import functools

import jax
import jax.numpy as jnp
import numpy as np
from jax import lax
from jax.experimental import pallas as pl
from jax.experimental.pallas import tpu as pltpu

# Contract over the lane (last) dim of both operands: A @ B^T without an explicit transpose.
_NT_DIMS = (((1,), (1,)), ((), ()))


# ----------------------------------------------------------------------------- kernel 1: context
def _context_kernel(x_ref, wkv_ref, bkv_ref, ctx_ref, m_sc, l_sc, acc_sc, *,
                    key_channels, hw_valid, masked):
    t = pl.program_id(1)
    hw_tile = x_ref.shape[2]

    @pl.when(t == 0)
    def _init():
        m_sc[...] = jnp.full_like(m_sc, -jnp.inf)
        l_sc[...] = jnp.zeros_like(l_sc)
        acc_sc[...] = jnp.zeros_like(acc_sc)

    x = x_ref[0]                                              # (C_in, hw_tile) bf16
    # Fused keys+values projection: one MXU call, bf16 operands, f32 accumulation + f32 bias.
    kv = jnp.dot(wkv_ref[...], x, preferred_element_type=jnp.float32) + bkv_ref[...]
    keys = kv[:key_channels, :]                               # (Ck, hw_tile) f32
    values = kv[key_channels:, :]                             # (Cv, hw_tile) f32

    if masked:  # static: only emitted when the spatial axis was zero-padded in the wrapper
        col = lax.broadcasted_iota(jnp.int32, (1, hw_tile), 1) + t * hw_tile
        keys = jnp.where(col < hw_valid, keys, -jnp.inf)      # padded lanes -> exp() == 0

    # Online softmax over the (tiled) spatial axis, per key channel.
    m_prev = m_sc[...]
    m_new = jnp.maximum(m_prev, jnp.max(keys, axis=-1, keepdims=True))   # (Ck, 1)
    corr = jnp.exp(m_prev - m_new)                                        # (Ck, 1)
    p = jnp.exp(keys - m_new)                                             # (Ck, hw_tile)
    l_sc[...] = corr * l_sc[...] + jnp.sum(p, axis=-1, keepdims=True)
    m_sc[...] = m_new

    # One full-width NT matmul (Ck, Cv); per-head contexts are its block-diagonal blocks.
    contrib = lax.dot_general(p.astype(jnp.bfloat16), values.astype(jnp.bfloat16),
                              _NT_DIMS, preferred_element_type=jnp.float32)
    # Single fused rescale + update RMW on the scratch (one vld + one vst).
    acc_sc[...] = corr * acc_sc[...] + contrib

    @pl.when(t == pl.num_programs(1) - 1)
    def _finalize():
        ctx_ref[0] = acc_sc[...] / l_sc[...]                  # exact divide, once per batch


# ----------------------------------------------------------------------------- kernel 2: attend
def _attend_kernel(x_ref, m_ref, seg_ref, wq_ref, bq_ref, br_ref, o_ref):
    x = x_ref[0]                                              # (C_in, hw_tile) bf16
    q_logits = jnp.dot(wq_ref[...], x, preferred_element_type=jnp.float32) + bq_ref[...]

    # Per-head channel softmax without a head loop:
    #  - subtracting the global (all-heads) per-column max is equivalent per head and stable,
    #  - the block-diagonal `seg` matmul broadcasts each head's denominator to its channels.
    e = jnp.exp(q_logits - jnp.max(q_logits, axis=0, keepdims=True))      # (Ck, hw_tile)
    denom = jnp.dot(seg_ref[...], e.astype(jnp.bfloat16),
                    preferred_element_type=jnp.float32)                   # (Ck, hw_tile)
    q = (e * pl.reciprocal(denom, approx=True)).astype(jnp.bfloat16)

    # Fused per-head attend + reprojection: one (C_in, Ck) @ (Ck, hw_tile) MXU call.
    reproj = jnp.dot(m_ref[0], q, preferred_element_type=jnp.float32) + br_ref[...]
    o_ref[0] = (reproj + x.astype(jnp.float32)).astype(o_ref.dtype)       # residual in f32


# ----------------------------------------------------------------------------- wrapper helpers
def _vmem_capacity_bytes():
    try:
        cap = getattr(pltpu.get_tpu_info(), "vmem_capacity_bytes", None)
        if cap:
            return int(cap)
    except Exception:
        pass
    return 64 << 20          # conservative fallback = v7x per-TensorCore VMEM


def _choose_hw_tile(hw_pad, c_in, kv_ch, budget_bytes):
    """Largest multiple-of-128 divisor of hw_pad whose pipelined footprint fits the budget."""
    best = 128               # hw_pad is always a multiple of 128, so 128 always divides it
    t = 128
    while t <= hw_pad:
        if hw_pad % t == 0:
            # double-buffered bf16 x input + double-buffered f32 output + weights/scratch slack
            footprint = 2 * c_in * t * 2 + 2 * c_in * t * 4 + 4 * kv_ch * c_in + (2 << 20)
            if footprint <= budget_bytes:
                best = t
        t += 128
    return best


# ----------------------------------------------------------------------------- wrapper
def efficient_attention(x, params, *, key_channels, head_count, value_channels, hw_tile=None):
    """x: (N, C_in, H, W) float32. params: 1x1-conv weights (out,in) and biases (out,1)."""
    n, c_in, h, w = x.shape
    hw = h * w
    hkc = key_channels // head_count
    hvc = value_channels // head_count
    kv_ch = key_channels + value_channels
    assert key_channels % head_count == 0 and value_channels % head_count == 0
    assert key_channels % 8 == 0 and value_channels % 8 == 0, \
        "sublane split of the fused K/V projection needs 8-aligned channel counts"

    hw_pad = ((hw + 127) // 128) * 128
    masked = hw_pad != hw

    vmem_cap = _vmem_capacity_bytes()
    vmem_limit = int(min(vmem_cap * 0.8, 100 * (1 << 20)))    # generation-aware scoped limit
    if hw_tile is None:
        hw_tile = _choose_hw_tile(hw_pad, c_in, kv_ch, int(vmem_limit * 0.75))
    assert hw_pad % hw_tile == 0
    num_t = hw_pad // hw_tile

    # bf16 x halves the dominant HBM stream (read once per pallas_call).
    x2 = x.reshape(n, c_in, hw).astype(jnp.bfloat16)
    if masked:
        x2 = jnp.pad(x2, ((0, 0), (0, 0), (0, hw_pad - hw)))

    # Fuse K and V projections into one resident weight; bf16 weights feed the MXU, biases f32.
    wkv = jnp.concatenate([params["wk"], params["wv"]], axis=0).astype(jnp.bfloat16)
    bkv = jnp.concatenate([params["bk"], params["bv"]], axis=0)
    wq = params["wq"].astype(jnp.bfloat16)
    bq, br = params["bq"], params["br"]

    ctx_cost = pl.CostEstimate(
        flops=int(n * hw_pad * (2 * kv_ch * c_in + 2 * key_channels * value_channels
                                + 6 * key_channels)),
        transcendentals=int(n * hw_pad * key_channels),
        bytes_accessed=int(2 * n * c_in * hw_pad + 2 * kv_ch * c_in + 4 * kv_ch
                           + 4 * n * key_channels * value_channels),
    )
    ctx = pl.pallas_call(
        functools.partial(_context_kernel, key_channels=key_channels,
                          hw_valid=hw, masked=masked),
        out_shape=jax.ShapeDtypeStruct((n, key_channels, value_channels), jnp.float32),
        grid=(n, num_t),
        in_specs=[
            pl.BlockSpec((1, c_in, hw_tile), lambda b, t: (b, 0, t)),       # x spatial tile
            pl.BlockSpec((kv_ch, c_in), lambda b, t: (0, 0)),               # fused K/V weight
            pl.BlockSpec((kv_ch, 1), lambda b, t: (0, 0)),                  # fused K/V bias
        ],
        out_specs=pl.BlockSpec((1, key_channels, value_channels), lambda b, t: (b, 0, 0)),
        scratch_shapes=[
            pltpu.VMEM((key_channels, 1), jnp.float32),                     # running max
            pltpu.VMEM((key_channels, 1), jnp.float32),                     # running sum
            pltpu.VMEM((key_channels, value_channels), jnp.float32),        # running context
        ],
        compiler_params=pltpu.CompilerParams(
            dimension_semantics=("parallel", "arbitrary"),
            vmem_limit_bytes=vmem_limit),
        cost_estimate=ctx_cost,
    )(x2, wkv, bkv)

    # Fold per-head context blocks (+ transpose) and the reprojection weight into a single
    # per-batch matrix: M[b] = concat_i over columns of wr[:, i] @ ctx_i[b]^T  -> (C_in, Ck).
    ctx_diag = jnp.stack([ctx[:, i * hkc:(i + 1) * hkc, i * hvc:(i + 1) * hvc]
                          for i in range(head_count)], axis=1)              # (n, H, hkc, hvc)
    wr_heads = params["wr"].reshape(c_in, head_count, hvc)
    m_fused = jnp.einsum("civ,nikv->ncik", wr_heads, ctx_diag
                         ).reshape(n, c_in, key_channels).astype(jnp.bfloat16)

    # Block-diagonal head-segment matrix: broadcasts each head's softmax denominator.
    head_ids = np.arange(key_channels) // hkc
    seg = jnp.asarray((head_ids[:, None] == head_ids[None, :]).astype(np.float32),
                      dtype=jnp.bfloat16)

    att_cost = pl.CostEstimate(
        flops=int(n * hw_pad * (2 * key_channels * c_in + 2 * key_channels * key_channels
                                + 2 * c_in * key_channels + 6 * key_channels)),
        transcendentals=int(n * hw_pad * key_channels),
        bytes_accessed=int(2 * n * c_in * hw_pad + 4 * n * c_in * hw_pad
                           + 2 * n * c_in * key_channels + 2 * key_channels * c_in
                           + 2 * key_channels * key_channels + 4 * (key_channels + c_in)),
    )
    out = pl.pallas_call(
        _attend_kernel,
        out_shape=jax.ShapeDtypeStruct((n, c_in, hw_pad), x.dtype),
        grid=(n, num_t),
        in_specs=[
            pl.BlockSpec((1, c_in, hw_tile), lambda b, t: (b, 0, t)),         # x spatial tile
            pl.BlockSpec((1, c_in, key_channels), lambda b, t: (b, 0, 0)),    # fused wr@ctx^T
            pl.BlockSpec((key_channels, key_channels), lambda b, t: (0, 0)),  # head segments
            pl.BlockSpec((key_channels, c_in), lambda b, t: (0, 0)),          # Q weight
            pl.BlockSpec((key_channels, 1), lambda b, t: (0, 0)),             # Q bias
            pl.BlockSpec((c_in, 1), lambda b, t: (0, 0)),                     # reproj bias
        ],
        out_specs=pl.BlockSpec((1, c_in, hw_tile), lambda b, t: (b, 0, t)),
        compiler_params=pltpu.CompilerParams(
            dimension_semantics=("parallel", "parallel"),
            vmem_limit_bytes=vmem_limit),
        cost_estimate=att_cost,
    )(x2, m_fused, seg, wq, bq, br)

    if masked:
        out = out[:, :, :hw]
    return out.reshape(n, c_in, h, w)


# ----------------------------------------------------------------------------- reference & test
def reference(x, params, *, key_channels, head_count, value_channels):
    """Pure-JAX (f32) reference mirroring the PyTorch forward."""
    n, c_in, h, w = x.shape
    hw = h * w
    x2 = x.reshape(n, c_in, hw)
    keys = jnp.einsum("oc,ncp->nop", params["wk"], x2) + params["bk"][None]
    queries = jnp.einsum("oc,ncp->nop", params["wq"], x2) + params["bq"][None]
    values = jnp.einsum("oc,ncp->nop", params["wv"], x2) + params["bv"][None]
    hkc = key_channels // head_count
    hvc = value_channels // head_count
    outs = []
    for i in range(head_count):
        k = jax.nn.softmax(keys[:, i * hkc:(i + 1) * hkc, :], axis=2)
        q = jax.nn.softmax(queries[:, i * hkc:(i + 1) * hkc, :], axis=1)
        v = values[:, i * hvc:(i + 1) * hvc, :]
        ctx = jnp.einsum("nkp,nvp->nkv", k, v)
        av = jnp.einsum("nkv,nkp->nvp", ctx, q)
        outs.append(av)
    agg = jnp.concatenate(outs, axis=1)
    reproj = jnp.einsum("ov,nvp->nop", params["wr"], agg) + params["br"][None]
    return (reproj + x2).reshape(n, c_in, h, w)


def make_params(key, in_channels, key_channels, value_channels):
    """Deterministic synthetic 1x1-conv parameters (weight (out,in), bias (out,1))."""
    ks = jax.random.split(key, 8)

    def wgt(k, o, i):
        return (jax.random.normal(k, (o, i), jnp.float32) / np.sqrt(i)).astype(jnp.float32)

    def bias(k, o):
        return (0.1 * jax.random.normal(k, (o, 1), jnp.float32)).astype(jnp.float32)

    return {
        "wk": wgt(ks[0], key_channels, in_channels),   "bk": bias(ks[1], key_channels),
        "wq": wgt(ks[2], key_channels, in_channels),   "bq": bias(ks[3], key_channels),
        "wv": wgt(ks[4], value_channels, in_channels), "bv": bias(ks[5], value_channels),
        "wr": wgt(ks[6], in_channels, value_channels), "br": bias(ks[7], in_channels),
    }


if __name__ == "__main__":
    KEY_CH, VAL_CH, HEADS = 16, 16, 2
    C_IN = 16
    root = jax.random.PRNGKey(0)
    k_x, k_p, k_x2 = jax.random.split(root, 3)
    params = make_params(k_p, C_IN, KEY_CH, VAL_CH)

    # Test A: H=W=16 (hw=256), explicit hw_tile=128 -> exercises the multi-tile online softmax.
    xa = jax.random.normal(k_x, (2, C_IN, 16, 16), jnp.float32)
    out_a = jax.block_until_ready(
        efficient_attention(xa, params, key_channels=KEY_CH, head_count=HEADS,
                            value_channels=VAL_CH, hw_tile=128))
    ref_a = reference(xa, params, key_channels=KEY_CH, head_count=HEADS, value_channels=VAL_CH)
    np.testing.assert_allclose(np.asarray(out_a), np.asarray(ref_a), rtol=5e-2, atol=5e-2)

    # Test B: H=W=12 (hw=144, not a multiple of 128), auto tile -> exercises the padded/masked
    # path and the generation-aware tile selection.
    xb = jax.random.normal(k_x2, (1, C_IN, 12, 12), jnp.float32)
    out_b = jax.block_until_ready(
        efficient_attention(xb, params, key_channels=KEY_CH, head_count=HEADS,
                            value_channels=VAL_CH))
    ref_b = reference(xb, params, key_channels=KEY_CH, head_count=HEADS, value_channels=VAL_CH)
    np.testing.assert_allclose(np.asarray(out_b), np.asarray(ref_b), rtol=5e-2, atol=5e-2)

    print("KERNEL_OK")
</pallas_src>

<mosaic_0001>
module attributes {stable_mosaic.version = 11 : i64} {
  func.func @_context_kernel(%arg0: i32, %arg1: i32, %arg2: memref<1x16x128xbf16, #tpu.memory_space<vmem>>, %arg3: memref<32x16xbf16, #tpu.memory_space<vmem>>, %arg4: memref<32x1xf32, #tpu.memory_space<vmem>>, %arg5: memref<1x16x16xf32, #tpu.memory_space<vmem>>, %arg6: memref<16x1xf32, #tpu.memory_space<vmem>>, %arg7: memref<16x1xf32, #tpu.memory_space<vmem>>, %arg8: memref<16x16xf32, #tpu.memory_space<vmem>>) attributes {dimension_semantics = [#tpu.dimension_semantics<parallel>, #tpu.dimension_semantics<arbitrary>], iteration_bounds = array<i64: 2, 2>, scalar_prefetch = 0 : i64, scratch_operands = 3 : i64, tpu.core_type = #tpu.core_type<tc>, window_params = [{transform_indices = @transform_0, window_bounds = array<i64: 1, 16, 128>}, {pipeline_mode = #tpu.pipeline_mode<synchronous>, transform_indices = @transform_1, window_bounds = array<i64: 32, 16>}, {pipeline_mode = #tpu.pipeline_mode<synchronous>, transform_indices = @transform_2, window_bounds = array<i64: 32, 1>}, {transform_indices = @transform_3, window_bounds = array<i64: 1, 16, 16>}]} {
    %c0_i32 = arith.constant 0 : i32
    %0 = arith.cmpi eq, %arg1, %c0_i32 : i32
    %1 = arith.extui %0 : i1 to i32
    %c0_i32_0 = arith.constant 0 : i32
    %2 = arith.cmpi ne, %1, %c0_i32_0 : i32
    scf.if %2 {
      %cst_23 = arith.constant 0xFF800000 : f32
      %39 = vector.broadcast %cst_23 : f32 to vector<16x1xf32>
      %c0_24 = arith.constant 0 : index
      %c0_25 = arith.constant 0 : index
      %40 = vector.load %arg6[%c0_24, %c0_25] : memref<16x1xf32, #tpu.memory_space<vmem>>, vector<16x1xf32>
      tpu.vector_store %arg6[%c0_24, %c0_25], %39 {strides = array<i32>} : memref<16x1xf32, #tpu.memory_space<vmem>>, vector<16x1xf32>,
      %cst_26 = arith.constant 0.000000e+00 : f32
      %41 = vector.broadcast %cst_26 : f32 to vector<16x1xf32>
      %c0_27 = arith.constant 0 : index
      %c0_28 = arith.constant 0 : index
      %42 = vector.load %arg7[%c0_27, %c0_28] : memref<16x1xf32, #tpu.memory_space<vmem>>, vector<16x1xf32>
      tpu.vector_store %arg7[%c0_27, %c0_28], %41 {strides = array<i32>} : memref<16x1xf32, #tpu.memory_space<vmem>>, vector<16x1xf32>,
      %cst_29 = arith.constant 0.000000e+00 : f32
      %43 = vector.broadcast %cst_29 : f32 to vector<16x16xf32>
      %c0_30 = arith.constant 0 : index
      %c0_31 = arith.constant 0 : index
      %44 = vector.load %arg8[%c0_30, %c0_31] : memref<16x16xf32, #tpu.memory_space<vmem>>, vector<16x16xf32>
      tpu.vector_store %arg8[%c0_30, %c0_31], %43 {strides = array<i32>} : memref<16x16xf32, #tpu.memory_space<vmem>>, vector<16x16xf32>,
    } else {
    }
    %c0 = arith.constant 0 : index
    %c0_1 = arith.constant 0 : index
    %c0_2 = arith.constant 0 : index
    %3 = vector.load %arg2[%c0, %c0_1, %c0_2] : memref<1x16x128xbf16, #tpu.memory_space<vmem>>, vector<1x16x128xbf16>
    %4 = vector.shape_cast %3 : vector<1x16x128xbf16> to vector<16x128xbf16>
    %c0_3 = arith.constant 0 : index
    %c0_4 = arith.constant 0 : index
    %5 = vector.load %arg3[%c0_3, %c0_4] : memref<32x16xbf16, #tpu.memory_space<vmem>>, vector<32x16xbf16>
    %cst = arith.constant dense<0.000000e+00> : vector<32x128xf32>
    %6 = tpu.matmul %5, %4, %cst {dimension_numbers = #tpu.dot_dimension_numbers<[1], [0], [0], [1], [0, 0, 1, 1], [], []>} : vector<32x16xbf16>, vector<16x128xbf16>, vector<32x128xf32> -> vector<32x128xf32>
    %c0_5 = arith.constant 0 : index
    %c0_6 = arith.constant 0 : index
    %7 = vector.load %arg4[%c0_5, %c0_6] : memref<32x1xf32, #tpu.memory_space<vmem>>, vector<32x1xf32>
    %8 = vector.broadcast %7 : vector<32x1xf32> to vector<32x128xf32>
    %9 = arith.addf %6, %8 : vector<32x128xf32>
    %10 = vector.extract_strided_slice %9 {offsets = [0, 0], sizes = [16, 128], strides = [1, 1]} : vector<32x128xf32> to vector<16x128xf32>
    %11 = vector.extract_strided_slice %9 {offsets = [16, 0], sizes = [16, 128], strides = [1, 1]} : vector<32x128xf32> to vector<16x128xf32>
    %c0_7 = arith.constant 0 : index
    %c0_8 = arith.constant 0 : index
    %12 = vector.load %arg6[%c0_7, %c0_8] : memref<16x1xf32, #tpu.memory_space<vmem>>, vector<16x1xf32>
    %cst_9 = arith.constant dense<0xFF800000> : vector<16xf32>
    %13 = vector.multi_reduction <maximumf>, %10, %cst_9 [1] : vector<16x128xf32> to vector<16xf32>
    %14 = vector.shape_cast %13 : vector<16xf32> to vector<16x1xf32>
    %15 = arith.maximumf %12, %14 : vector<16x1xf32>
    %16 = arith.subf %12, %15 : vector<16x1xf32>
    %17 = math.exp %16 : vector<16x1xf32>
    %18 = vector.broadcast %15 : vector<16x1xf32> to vector<16x128xf32>
    %19 = arith.subf %10, %18 : vector<16x128xf32>
    %20 = math.exp %19 : vector<16x128xf32>
    %c0_10 = arith.constant 0 : index
    %c0_11 = arith.constant 0 : index
    %21 = vector.load %arg7[%c0_10, %c0_11] : memref<16x1xf32, #tpu.memory_space<vmem>>, vector<16x1xf32>
    %22 = arith.mulf %17, %21 : vector<16x1xf32>
    %cst_12 = arith.constant dense<0.000000e+00> : vector<16xf32>
    %23 = vector.multi_reduction <add>, %20, %cst_12 [1] : vector<16x128xf32> to vector<16xf32>
    %24 = vector.shape_cast %23 : vector<16xf32> to vector<16x1xf32>
    %25 = arith.addf %22, %24 : vector<16x1xf32>
    %c0_13 = arith.constant 0 : index
    %c0_14 = arith.constant 0 : index
    %26 = vector.load %arg7[%c0_13, %c0_14] : memref<16x1xf32, #tpu.memory_space<vmem>>, vector<16x1xf32>
    tpu.vector_store %arg7[%c0_13, %c0_14], %25 {strides = array<i32>} : memref<16x1xf32, #tpu.memory_space<vmem>>, vector<16x1xf32>,
    %c0_15 = arith.constant 0 : index
    %c0_16 = arith.constant 0 : index
    %27 = vector.load %arg6[%c0_15, %c0_16] : memref<16x1xf32, #tpu.memory_space<vmem>>, vector<16x1xf32>
    tpu.vector_store %arg6[%c0_15, %c0_16], %15 {strides = array<i32>} : memref<16x1xf32, #tpu.memory_space<vmem>>, vector<16x1xf32>,
    %28 = arith.truncf %20 : vector<16x128xf32> to vector<16x128xbf16>
    %29 = arith.truncf %11 : vector<16x128xf32> to vector<16x128xbf16>
    %cst_17 = arith.constant dense<0.000000e+00> : vector<16x16xf32>
    %30 = tpu.matmul %28, %29, %cst_17 {dimension_numbers = #tpu.dot_dimension_numbers<[1], [1], [0], [0], [0, 0, 1, 0], [], []>} : vector<16x128xbf16>, vector<16x128xbf16>, vector<16x16xf32> -> vector<16x16xf32>
    %c0_18 = arith.constant 0 : index
    %c0_19 = arith.constant 0 : index
    %31 = vector.load %arg8[%c0_18, %c0_19] : memref<16x16xf32, #tpu.memory_space<vmem>>, vector<16x16xf32>
    %32 = vector.broadcast %17 : vector<16x1xf32> to vector<16x16xf32>
    %33 = arith.mulf %32, %31 : vector<16x16xf32>
    %34 = arith.addf %33, %30 : vector<16x16xf32>
    %c0_20 = arith.constant 0 : index
    %c0_21 = arith.constant 0 : index
    %35 = vector.load %arg8[%c0_20, %c0_21] : memref<16x16xf32, #tpu.memory_space<vmem>>, vector<16x16xf32>
    tpu.vector_store %arg8[%c0_20, %c0_21], %34 {strides = array<i32>} : memref<16x16xf32, #tpu.memory_space<vmem>>, vector<16x16xf32>,
    %c1_i32 = arith.constant 1 : i32
    %36 = arith.cmpi eq, %arg1, %c1_i32 : i32
    %37 = arith.extui %36 : i1 to i32
    %c0_i32_22 = arith.constant 0 : i32
    %38 = arith.cmpi ne, %37, %c0_i32_22 : i32
    scf.if %38 {
      %c0_23 = arith.constant 0 : index
      %c0_24 = arith.constant 0 : index
      %39 = vector.load %arg8[%c0_23, %c0_24] : memref<16x16xf32, #tpu.memory_space<vmem>>, vector<16x16xf32>
      %c0_25 = arith.constant 0 : index
      %c0_26 = arith.constant 0 : index
      %40 = vector.load %arg7[%c0_25, %c0_26] : memref<16x1xf32, #tpu.memory_space<vmem>>, vector<16x1xf32>
      %41 = vector.broadcast %40 : vector<16x1xf32> to vector<16x16xf32>
      %42 = arith.divf %39, %41 : vector<16x16xf32>
      %c0_27 = arith.constant 0 : index
      %c0_28 = arith.constant 0 : index
      %c0_29 = arith.constant 0 : index
      %43 = vector.load %arg5[%c0_27, %c0_28, %c0_29] : memref<1x16x16xf32, #tpu.memory_space<vmem>>, vector<1x16x16xf32>
      %44 = vector.shape_cast %43 : vector<1x16x16xf32> to vector<16x16xf32>
      %45 = vector.shape_cast %42 : vector<16x16xf32> to vector<1x16x16xf32>
      tpu.vector_store %arg5[%c0_27, %c0_28, %c0_29], %45 {strides = array<i32>} : memref<1x16x16xf32, #tpu.memory_space<vmem>>, vector<1x16x16xf32>,
    } else {
    }
    return
  }
  func.func @transform_0(%arg0: i32, %arg1: i32) -> (i32, i32, i32) {
    %c0_i32 = arith.constant 0 : i32
    %c0_i32_0 = arith.constant 0 : i32
    return %arg0, %c0_i32, %arg1 : i32, i32, i32
  }
  func.func @transform_1(%arg0: i32, %arg1: i32) -> (i32, i32) {
    %c0_i32 = arith.constant 0 : i32
    %c0_i32_0 = arith.constant 0 : i32
    %c0_i32_1 = arith.constant 0 : i32
    return %c0_i32, %c0_i32_0 : i32, i32
  }
  func.func @transform_2(%arg0: i32, %arg1: i32) -> (i32, i32) {
    %c0_i32 = arith.constant 0 : i32
    %c0_i32_0 = arith.constant 0 : i32
    %c0_i32_1 = arith.constant 0 : i32
    return %c0_i32, %c0_i32_0 : i32, i32
  }
  func.func @transform_3(%arg0: i32, %arg1: i32) -> (i32, i32, i32) {
    %c0_i32 = arith.constant 0 : i32
    %c0_i32_0 = arith.constant 0 : i32
    %c0_i32_1 = arith.constant 0 : i32
    return %arg0, %c0_i32, %c0_i32_0 : i32, i32, i32
  }
}

</mosaic_0001>

<bundles_post_ra>
// kernel: tpu_custom_call.1
= control target key start
LH: loop header
LB: loop body
LE: loop exit
PB: predicated region body
PF: predicated region fallthrough
CT: control target
= control target key end

     0   :  { %8 = vsyncpa [#allocation7], 0  ;;  %s1072_s0 = inlined_call_operand.vmem [shape: bf16[2,16,256], index: 0, kind: input, shape index: {}]   ;;  %s1073_s1 = inlined_call_operand.vmem [shape: bf16[32,16], index: 1, kind: input, shape index: {}]   ;;  %s1074_s2 = inlined_call_operand.vmem [shape: f32[32,1], index: 2, kind: input, shape index: {}]   ;;  %s1075_s3 = inlined_call_operand.hbm [shape: f32[2,16,16], index: 3, kind: output, shape index: {}]  }
   0x1   :  { %10 = vsyncpa [#allocation7 + $0x1], 0  ;;  %s864_s12 = smov 0   ;;  %s866_s13 = smov 0  }
   0x2   :  { %s868_s14 = smov 0   ;;  %s870_s15 = smov 0  }
   0x3   :  { %s872_s16 = smov 0   ;;  %s874_s17 = smov 0  }
   0x4   :  { %s876_s18 = smov 0   ;;  %s878_s19 = smov 0  }
   0x5   :  { %s880_s20 = smov 0   ;;  %s882_s21 = smov 0  }
   0x6 LB: > { %s570_s22 = sadd.s32 4294967295, %s833_s21   ;;  %s571_s23 = sadd.s32 4294967294, %s833_s21   ;;  %s833_s21 = sphi %s882_s21, %s16_s21   ;;  %s829_s20 = sphi %s880_s20, %s1087_s20   ;;  %s825_s19 = sphi %s878_s19, %s1086_s19   ;;  %s821_s18 = sphi %s876_s18, %s1085_s18   ;;  %s817_s17 = sphi %s874_s17, %s1084_s17   ;;  %s813_s16 = sphi %s872_s16, %s1083_s16   ;;  %s809_s15 = sphi %s870_s15, %s1082_s15   ;;  %s805_s14 = sphi %s868_s14, %s1081_s14   ;;  %s801_s13 = sphi %s866_s13, %s1080_s13   ;;  %s797_s12 = sphi %s864_s12, %s1079_s12  }
   0x7   : > { %s25_s24 = sadd.s32 1, %s825_s19  ;;  %s28_s25 = sadd.s32 1, %s829_s20 }
   0x8   : > { %p26_p0 = scmp.ge.s32.totalorder %s25_s24, 2  ;;  %s37_s26 = sadd.s32 1, %s813_s16 }
   0x9   : > { %p44_p1 = scmp.ne.s32.totalorder %s813_s16, %s809_s15  ;;  %p45_p2 = scmp.eq.s32.totalorder %s833_s21, 0 }
   0xa   : > { %s1089_s24 = smov (%p26_p0, %s25_s24), 0  ;;  %s1091_s25 = smov (!%p26_p0, %s28_s25), %s829_s20 }
   0xb   : > { %s33_s27 = ssub.s32 %s825_s19, %s1089_s24  ;;  %p927_p3 = por %p45_p2, %p44_p1 }
   0xc   : > { %p30_p4 = scmp.ge.s32.totalorder %s1091_s25, 2  ;;  %s105_s29 = sadd.s32 1, %s805_s14 }
   0xd   : > { %p115_p5 = scmp.ne.s32.totalorder %s805_s14, %s801_s13  ;;  %p116_p6 = scmp.eq.s32.totalorder %s570_s22, 3 }
   0xe   : > { %s1093_s25 = smov (%p30_p4, %s1091_s25), 0  ;;  %p121_p8 = scmp.ne.s32.totalorder %s801_s13, %s797_s12 }
   0xf   : > { %p936_p7 = por %p116_p6, %p115_p5  ;;  %s32_s4 = ssub.s32 %s829_s20, %s1093_s25 }
  0x10   : > { %p122_p9 = scmp.eq.s32.totalorder %s571_s23, 3  ;;  %s34_s5 = sor.u32 %s33_s27, %s32_s4 }
  0x11   : > { %p103_p10 = scmp.eq.s32.totalorder %s32_s4, 0  ;;  %p35_p11 = scmp.eq.s32.totalorder %s34_s5, 0 }
  0x12   : > { %p944_p12 = por %p122_p9, %p121_p8  ;;  %p573_p13 = scmp.ge.s32.totalorder %s833_s21, 4 }
  0x13   : > { %s949_s7 = scalar_select %p103_p10, %s805_s14, %s105_s29  }
  0x14   : > { %s952_s8 = scalar_select %p35_p11, %s813_s16, %s37_s26  }
  0x15   : > { %144 = sbr.rel (%p573_p13) target bundleno = 35 (0x23), region = 24 }
  0x1c   : > { %147 = sbr.rel (!%p927_p3) target bundleno = 35 (0x23), region = 28  ;;  %s149_s9 = sand.u32 (%p927_p3), 1, %s813_s16  }
  0x1d   : > { %s575_s10 = sshll.u32 (%p927_p3), %s829_s20, 2  ;;  %s574_s11 = sshll.u32 (%p927_p3), %s149_s9, 3 }
  0x1e   : > { %s153_s22 = sadd.s32 (%p927_p3), %s825_s19, %s575_s10  ;;  %s151_s26 = scalar_lea.vmem (%p927_p3), [#allocation5], %s574_s11 }
  0x1f   : > { %s576_s23 = sshll.u32 (%p927_p3), %s153_s22, 2 }
  0x20   : > { %s155_s29 = scalar_lea.vmem (%p927_p3), %s1072_s0, %s576_s23 }
  0x21   : > { %v171_v0 = vld [vmem:[%s155_s29] sm:$0xf] (%p927_p3)  ;;  %v173_v1 = vld [vmem:[%s155_s29 + $0x8] sm:$0xf] (%p927_p3) }
  0x22   : > { %172 = vst [vmem:[%s151_s26] sm:$0xf] (%p927_p3), %v171_v0  ;;  %174 = vst [vmem:[%s151_s26 + $0x4] sm:$0xf] (%p927_p3), %v173_v1 }
  0x23 PF: > { %p577_p0 = scmp.ge.s32.totalorder %s833_s21, 1  ;;  %p200_p1 = scmp.lt.s32.totalorder %s833_s21, 5 }
  0x25   : > { %p201_p2 = pnand %p577_p0, %p200_p1 }
  0x26   : > { %s207_s28 = sand.u32 (!%p201_p2), 1, %s809_s15   ;;  %s227_s5 = sand.u32 (!%p201_p2), 1, %s801_s13  }
  0x27   : > { %204 = sbr.rel (%p201_p2) target bundleno = 883 (0x373), region = 69  ;;  %s578_s9 = sshll.u32 (!%p201_p2), %s207_s28, 3 }
  0x28   : > { %s579_s10 = sshll.u32 (!%p201_p2), %s227_s5, 4  ;;  %s209_s22 = scalar_lea.vmem (!%p201_p2), [#allocation5], %s578_s9 }
  0x29   : > { %s969_s11 = scalar_lea.vmem (!%p201_p2), [#allocation6], %s579_s10  ;;  %p580_p3 = scmp.ne.s32.totalorder (!%p201_p2), %s817_s17, 0 }
  0x2e   : > { %234 = sbr.rel (%p580_p3) target bundleno = 53 (0x35), region = 77  ;;  %vm235_vm0 = vcmask (!%p580_p3), 7168   ;;  %vm240_vm1 = vcmask (!%p580_p3), 130048   ;;  %v835_v2 = vmov (!%p580_p3), -inf   ;;  %v836_v3 = vmov (!%p580_p3), 0.0  }
  0x2f   : > { %236 = vst.msk [vmem:[#allocation2] sm:$0xff] (!%p580_p3), %vm235_vm0, %v835_v2  ;;  %237 = vst.msk [vmem:[#allocation2 + $0x8] sm:$0xff] (!%p580_p3), %vm235_vm0, %v835_v2 }
  0x30   : > { %238 = vst.msk [vmem:[#allocation3] sm:$0xff] (!%p580_p3), %vm235_vm0, %v836_v3  ;;  %239 = vst.msk [vmem:[#allocation3 + $0x8] sm:$0xff] (!%p580_p3), %vm235_vm0, %v836_v3 }
  0x31   : > { %241 = vst.msk [vmem:[#allocation4] sm:$0xff] (!%p580_p3), %vm240_vm1, %v836_v3  ;;  %242 = vst.msk [vmem:[#allocation4 + $0x8] sm:$0xff] (!%p580_p3), %vm240_vm1, %v836_v3 }
  0x35 PF: > { %v707_v4 = vld [vmem:[%s209_s22] sm:$0xff]   ;;  %vm289_vm2 = vcmask 130048   ;;  %v708_v5 = vld [vmem:[%s1073_s1] sm:$0xff]   ;;  %v709_v6 = vld [vmem:[%s1073_s1 + $0x8] sm:$0xff]   ;;  %v837_v7 = vmov 0   ;;  %vm385_vm3 = vcmask 7168  }
  0x36   : > { %598 = vmatprep.subr.bf16.mxu0 %v707_v4  ;;  %705 = vset.pattern.permute.xlu0 %v837_v7  ;;  %v249_v8 = vld [vmem:[%s1074_s2] sm:$0xff]  ;;  %v250_v9 = vld [vmem:[%s1074_s2 + $0x8] sm:$0xff]  ;;  %v251_v24 = vld [vmem:[%s1074_s2 + $0x10] sm:$0xff]  ;;  %v838_v28 = vmov 0.0   ;;  %vm839_vm4 = vmmov 0   ;;  %p586_p4 = scmp.ne.s32.totalorder %s817_s17, 1 }
  0x37   : > { %599 = vmatpush3.bf16.msra.mxu0 %v707_v4  ;;  %600 = vmatprep.mubr.msk.bf16.mxu0 %vm289_vm2, %v708_v5  ;;  %v345_v18 = vld [vmem:[#allocation2] sm:$0xff]  ;;  %v346_v21 = vld [vmem:[#allocation2 + $0x8] sm:$0xff]  ;;  %v252_v27 = vld [vmem:[%s1074_s2 + $0x18] sm:$0xff]  ;;  %v840_v4 = vmov (!%p586_p4), 0  }
  0x38   : > { %255 = vperm.xlu0 %705, %v249_v8   ;;  %706 = vset.pattern.permute.xlu1 %v837_v7  ;;  %v375_v47 = vld [vmem:[#allocation3] sm:$0xff]  ;;  %v376_v50 = vld [vmem:[#allocation3 + $0x8] sm:$0xff]  ;;  %v433_v55 = vld [vmem:[#allocation4] sm:$0xff] }
  0x39   : > { %604 = vmatprep.subr.bf16.mxu1 %v838_v28  ;;  %606 = vmatprep.mubr.msk.bf16.mxu1 %vm839_vm4, %v838_v28  ;;  %v434_v57 = vld [vmem:[#allocation4 + $0x8] sm:$0xff] }
  0x3a   : > { %601 = vmatmul.mubr.msk.bf16.vlgmr.msra.gmra.mrb[0].mxu0 %vm289_vm2, %v709_v6 }
  0x3c   : > { %260 = vperm.xlu0 %705, %v250_v9  }
  0xb7   : > { %v256_v10 = vpop.permute.xlu0 %255 }
  0xbb   : > { %v261_v16 = vpop.permute.xlu0 %260 }
 0x10d   : > { %v602_v11 = vpop.f32.mrb[0].mxu0 }
 0x10e   : > { %v330_v12 = vpop.f32.mrb[1].mxu0 }
 0x10f   : > { %v331_v13 = vadd.f32 %v330_v12, %v256_v10  ;;  %v603_v14 = vpop.f32.mrb[2].mxu0 }
 0x110   : > { %v333_v15 = vpop.f32.mrb[3].mxu0 }
 0x111   : > { %347 = vmax.xlane.f32.xlu1 %v331_v13  ;;  %v334_v17 = vadd.f32 %v333_v15, %v261_v16 }
 0x115   : > { %349 = vmax.xlane.f32.xlu1 %v334_v17 }
 0x19e   : > { %v348_v19 = vpop.xlane.xlu1 %347 }
 0x19f   : > { %v351_v20 = vmax.f32 %v345_v18, %v348_v19 }
 0x1a1   : > { %v353_v22 = vsub.f32 %v345_v18, %v351_v20  ;;  %388 = vst.msk [vmem:[#allocation2] sm:$0xff] %vm385_vm3, %v351_v20  ;;  %361 = vperm.xlu0 %705, %v351_v20  }
 0x1a2   : > { %v350_v23 = vpop.xlane.xlu1 %349 }
 0x1a3   : > { %v352_v25 = vmax.f32 %v346_v21, %v350_v23  ;;  %v355_v44 = vmul.f32 1.442695, %v353_v22 }
 0x1a5   : > { %v354_v26 = vsub.f32 %v346_v21, %v352_v25  ;;  %389 = vst.msk [vmem:[#allocation2 + $0x8] sm:$0xff] %vm385_vm3, %v352_v25  ;;  %265 = vperm.xlu0 %705, %v251_v24   ;;  %366 = vperm.xlu1 %706, %v352_v25  }
 0x1a7   : > { %v357_v43 = vmul.f32 1.442695, %v354_v26 }
 0x1a9   : > { %270 = vperm.xlu0 %705, %v252_v27  }
 0x220   : > { %v362_v29 = vpop.permute.xlu0 %361 }
 0x221   : > { %v369_v30 = vsub.f32 %v331_v13, %v362_v29 }
 0x223   : > { %v371_v31 = vmul.f32 1.442695, %v369_v30 }
 0x224   : > { %v266_v32 = vpop.permute.xlu0 %265  ;;  %v367_v33 = vpop.permute.xlu1 %366 }
 0x225   : > { %710 = vpow2.f32 %v371_v31  ;;  %v370_v34 = vsub.f32 %v334_v17, %v367_v33  ;;  %v339_v37 = vadd.f32 %v602_v11, %v266_v32 }
 0x227   : > { %v373_v35 = vmul.f32 1.442695, %v370_v34 }
 0x228   : > { %v271_v36 = vpop.permute.xlu0 %270 }
 0x229   : > { %712 = vpow2.f32 %v373_v35  ;;  %v342_v38 = vadd.f32 %v603_v14, %v271_v36 }
 0x22a   : > { %714 = vpow2.f32 %v357_v43 }
 0x22b   : > { %v391_v39 = vpack.c.bf16 %v342_v38, %v339_v37  ;;  %716 = vpow2.f32 %v355_v44 }
 0x22d   : > { %605 = vmatpush3.bf16.xpose.msra.mxu1 %v391_v39 }
 0x22f   : > { %v711_v40 = vpop.eup %710 }
 0x230   : > { %379 = vadd.xlane.f32.xlu0 %v711_v40 }
 0x233   : > { %v713_v41 = vpop.eup %712 }
 0x234   : > { %381 = vadd.xlane.f32.xlu1 %v713_v41  ;;  %v390_v42 = vpack.c.bf16 %v713_v41, %v711_v40  ;;  %v715_v45 = vpop.eup %714 }
 0x235   : > { %v717_v46 = vpop.eup %716  ;;  %v378_v52 = vmul.f32 %v715_v45, %v376_v50 }
 0x236   : > { %607 = vmatmul.mubr.bf16.vlgmr.msra.gmra.mrb[0].mxu1 %v390_v42  ;;  %v377_v48 = vmul.f32 %v717_v46, %v375_v47 }
 0x245   : > { %442 = vperm.xlu1 %706, %v715_v45  }
 0x246   : > { %437 = vperm.xlu0 %705, %v717_v46  }
 0x24a   : > { %718 = vset.pattern.permute.xlu0 (!%p586_p4), %v840_v4 }
 0x2bd   : > { %v380_v49 = vpop.xlane.xlu0 %379 }
 0x2be   : > { %v383_v51 = vadd.f32 %v380_v49, %v377_v48 }
 0x2c0   : > { %386 = vst.msk [vmem:[#allocation3] sm:$0xff] %vm385_vm3, %v383_v51 }
 0x2c1   : > { %v382_v53 = vpop.xlane.xlu1 %381 }
 0x2c2   : > { %v384_v54 = vadd.f32 %v382_v53, %v378_v52 }
 0x2c4   : > { %387 = vst.msk [vmem:[#allocation3 + $0x8] sm:$0xff] %vm385_vm3, %v384_v54 }
 0x2c5   : > { %v438_v56 = vpop.permute.xlu0 %437  ;;  %v443_v58 = vpop.permute.xlu1 %442 }
 0x2c6   : > { %v445_v59 = vmul.f32 %v438_v56, %v433_v55  ;;  %v446_v61 = vmul.f32 %v443_v58, %v434_v57 }
 0x2c7   : > { %v457_v3 = vld [vmem:[#allocation3] sm:$0xff] (!%p586_p4) }
 0x2c8   : > { %461 = vperm.xlu0 (!%p586_p4), %718, %v457_v3  }
 0x2cb   : > { %v458_v5 = vld [vmem:[#allocation3 + $0x8] sm:$0xff] (!%p586_p4) }
 0x2cc   : > { %466 = vperm.xlu0 (!%p586_p4), %718, %v458_v5  }
 0x308   : > { %454 = sbr.rel (%p586_p4) target bundleno = 858 (0x35a), region = 81 }
 0x309   : > { %v426_v60 = vpop.f32.mrb[0].mxu1 }
 0x30a   : > { %v447_v62 = vadd.f32 %v445_v59, %v426_v60  ;;  %v608_v63 = vpop.f32.mrb[1].mxu1 }
 0x30b   : > { %v429_v0 = vpop.f32.mrb[2].mxu1 }
 0x30c   : > { %449 = vst.msk [vmem:[#allocation4] sm:$0xff] %vm289_vm2, %v447_v62  ;;  %v448_v1 = vadd.f32 %v446_v61, %v429_v0  ;;  %v609_v2 = vpop.f32.mrb[3].mxu1 }
 0x30e   : > { %450 = vst.msk [vmem:[#allocation4 + $0x8] sm:$0xff] %vm289_vm2, %v448_v1 }
 0x313   : > { %v455_v8 = vld [vmem:[#allocation4] sm:$0xff] }
 0x315   : > { %v456_v11 = vld [vmem:[#allocation4 + $0x8] sm:$0xff] }
 0x347   : > { %v462_v6 = vpop.permute.xlu0 %461 }
 0x348   : > { %719 = vrcp.f32 %v462_v6 }
 0x34b   : > { %v467_v7 = vpop.permute.xlu0 %466 }
 0x34c   : > { %721 = vrcp.f32 %v467_v7 }
 0x352   : > { %v720_v9 = vpop.eup %719 }
 0x353   : > { %v470_v10 = vmul.f32 %v720_v9, %v455_v8 }
 0x355   : > { %473 = vst.msk [vmem:[%s969_s11] sm:$0xff] %vm289_vm2, %v470_v10 }
 0x356   : > { %v722_v12 = vpop.eup %721 }
 0x357   : > { %v472_v13 = vmul.f32 %v722_v12, %v456_v11 }
 0x359   : > { %474 = vst.msk [vmem:[%s969_s11 + $0x8] sm:$0xff] %vm289_vm2, %v472_v13 }
 0x35a PF: > { %s592_s17 = sshll.u32 %s821_s18, 8  ;;  %s489_s26 = sshll.u32 %s969_s11, 4  ;;  %s1010_s26 = int_to_ptr.vmem [resolvable:$true] %s489_s26 }
 0x35b   : > { %s1007_s29 = scalar_lea.hbm %s1075_s3, %s592_s17  ;;  %s1014_s28 = scalar_lea.sflag [#allocation7], %s227_s5 }
 0x35c   : > { %s723_s9 = scalar_lea.vmem %s1010_s26, 256  ;;  %s841_s18 = smov [#allocation6]  }
 0x35d   : > { %p724_p5 = scmp.ne.s32.totalorder %s1010_s26, %s723_s9  ;;  %s727_s10 = sshll.u32 %s841_s18, 4  ;;  %s728_s10 = int_to_ptr.vmem [resolvable:$false] %s727_s10 }
 0x35e   : > { %s729_s22 = scalar_lea.vmem %s728_s10, 512  ;;  %p730_p9 = scmp.lt.s32.totalorder %s1010_s26, %s728_s10 }
 0x35f   : > { %p725_p6 = pnand %p724_p5, %p936_p7  ;;  %p731_p10 = scmp.lt.s32.totalorder %s729_s22, %s723_s9 }
 0x361   : > { %p726_p8 = pneg %p725_p6  ;;  %p732_p11 = por %p731_p10, %p730_p9 }
 0x363   : > { %p733_p13 = pnand %p732_p11, %p726_p8 }
 0x365   : > { %736 = shalt.err (!%p733_p13)
}
 0x366   : > { %s737_s5 = scalar_lea.hbm %s1007_s29, 256  ;;  %s741_s23 = scalar_lea.hbm %s1075_s3, 512 }
 0x367   : > { %p738_p0 = scmp.ne.s32.totalorder %s1007_s29, %s737_s5  ;;  %p742_p3 = scmp.lt.u32.totalorder %s1007_s29, %s1075_s3 }
 0x368   : > { %p743_p4 = scmp.lt.u32.totalorder %s741_s23, %s737_s5  ;;  %p745_p6 = scmp.lt.u32.totalorder %s737_s5, %s1007_s29 }
 0x369   : > { %p739_p1 = pnand %p738_p0, %p936_p7 }
 0x36a   : > { %p744_p5 = por %p743_p4, %p742_p3 }
 0x36b   : > { %p740_p2 = pneg %p739_p1 }
 0x36c   : > { %p746_p8 = por %p745_p6, %p744_p5 }
 0x36e   : > { %p747_p9 = pnand %p746_p8, %p740_p2 }
 0x370   : > { %750 = shalt.err (!%p747_p9)
}
 0x371   : > { %s842_s4 = smov 128   ;;  %s843_s9 = smov 8  }
 0x372   : > { %610 = dma.vmem_to_hbm [thread:$0]  (%p936_p7), %s1010_s26, 256, %s1007_s29, %s1014_s28, %s842_s4, %s842_s4, %s843_s9  }
 0x373 PF: > { %p616_p10 = scmp.ge.s32.totalorder %s833_s21, 2  ;;  %s504_s18 = sand.u32 1, %s797_s12  }
 0x374   : > { %s505_s10 = scalar_lea.sflag [#allocation7], %s504_s18 }
 0x375   : > { %p613_p11 = pnand %p616_p10, %p944_p12 }
 0x377   : > { %792 = dma.done.wait (!%p613_p11), %s505_s10, 256  }
 0x378   : > { %794 = vsyncadd (!%p613_p11), %s505_s10, 4294967040  ;;  %s16_s21 = sadd.s32 1, %s833_s21   ;;  %s1079_s12 = smov %s801_s13 }
 0x379   : > { %p13_p13 = scmp.ge.s32.totalorder %s16_s21, 6   ;;  %s1080_s13 = smov %s805_s14 }
 0x37a   : > { %s1081_s14 = smov %s949_s7  ;;  %s1082_s15 = smov %s813_s16 }
 0x37b   : > { %s1083_s16 = smov %s952_s8  ;;  %s1084_s17 = smov %s825_s19 }
 0x37c   : > { %s1085_s18 = smov %s829_s20  ;;  %s1086_s19 = smov %s1089_s24 }
 0x37d   : > { %s1087_s20 = smov %s1093_s25  ;;  %15 = sbr.rel (!%p13_p13) target bundleno = 6 (0x6), region = 121 }
 0x384   :  { %510 = vsyncpa [#allocation7], 1 }
 0x385   :  { %512 = vsyncpa [#allocation7 + $0x1], 1 }

</bundles_post_ra>
